<compile_context>
chip_gen: v7x
topology: tpu7x:2x2x1
jax: 0.10.0
libtpu: 0.0.40
codegen_flags: <defaults>
</compile_context>

<pallas_src>
import jax
import jax.numpy as jnp
from jax.experimental import pallas as pl
from jax.experimental.pallas import tpu as pltpu


D_MODEL = 32
PACK = 4                      # feature rows packed per 128-lane row
LANES = PACK * D_MODEL        # 128
LN_EPS = 1e-5                 # PyTorch nn.LayerNorm default eps


def _fusion_kernel(p_ref, a_ref, w_ref, b_ref, o_ref):
    f32 = jnp.float32
    bf16 = jnp.bfloat16
    L = LANES

    def mm(x, w):
        return jnp.dot(x.astype(bf16), w, preferred_element_type=f32)

    p = p_ref[...]
    a = a_ref[...]

    # ---- periodic / aperiodic transforms (block-diag Linear(d,d)) ------------
    pt = mm(p, w_ref[0:L, 0:L]) + b_ref[:, 0:L]
    at = mm(a, w_ref[0:L, L:2 * L]) + b_ref[:, L:2 * L]

    # ---- importance-hidden + gate: one K=256 matmul on [pt | at] -------------
    pt_at = jnp.concatenate([pt, at], axis=-1)                   # (tm, 2L)
    hg = mm(pt_at, w_ref[:, 2 * L:4 * L]) + b_ref[:, 2 * L:4 * L]
    h = jnp.maximum(hg[:, 0:L], 0.0)                             # ReLU branch
    g = jax.nn.sigmoid(hg[:, L:2 * L])                           # gate branch

    # ---- 2-way softmax == sigmoid of logit difference ------------------------
    # R folds (wi2[:,0]-wi2[:,1]) into a block-diag segmented-sum matrix, so the
    # per-32-lane reduction runs on the MXU and stays lane-dense.
    score = mm(h, w_ref[0:L, 4 * L:5 * L]) + b_ref[:, 4 * L:5 * L]
    w_per = jax.nn.sigmoid(score)
    w_aper = 1.0 - w_per
    one_minus_g = 1.0 - g

    wpa = jnp.concatenate([pt * (w_per * g),
                           at * (w_aper * one_minus_g)], axis=-1)  # (tm, 2L)

    # ---- final fusion: Linear(2d,d) -> LayerNorm(d) -> ReLU -> Linear(d,d) ----
    f = mm(wpa, w_ref[:, 5 * L:6 * L]) + b_ref[:, 5 * L:6 * L]
    m_seg = w_ref[0:L, 6 * L:7 * L]            # block-diag per-segment mean matrix
    mu = mm(f, m_seg)
    c = f - mu
    var = mm(c * c, m_seg)
    f = c * jax.lax.rsqrt(var + LN_EPS) * b_ref[:, 6 * L:7 * L] + b_ref[:, 7 * L:8 * L]
    f = jnp.maximum(f, 0.0)

    out = mm(f, w_ref[0:L, 7 * L:8 * L]) + b_ref[:, 8 * L:9 * L]
    o_ref[...] = out.astype(o_ref.dtype)


def _pack_params(params, d=D_MODEL, pack=PACK):
    """Pack all parameters into one bf16 weight slab and one f32 bias slab.

    Weight slab (2L, 8L), L=pack*d, every segment 128-lane aligned:
      [0,L)=bd(wp)        [L,2L)=bd(wa)
      [2L,4L)= [[bd(wi1p)|bd(wgp)], [bd(wi1a)|bd(wga)]]   (K=2L)
      [4L,5L)=R (segmented importance-sum)  [5L,6L)=[bd(wf1p); bd(wf1a)] (K=2L)
      [6L,7L)=M (segmented mean, 1/d blocks)  [7L,8L)=bd(wf2)
    Bias slab (1, 9L):
      bp | ba | bi1 | bg | b_imp(replicated) | bf1 | ln_gamma | ln_beta | bf2
    """
    L = pack * d
    eye = jnp.eye(pack, dtype=jnp.float32)

    def bd(w):                      # (d, m) -> (pack*d, pack*m) block-diagonal
        return jnp.kron(eye, w.astype(jnp.float32))

    def tile_b(b):                  # (1, d) -> (1, pack*d)
        return jnp.tile(b.astype(jnp.float32), (1, pack))

    def pad_rows(w):                # (L, m) -> (2L, m), bottom half unused/zero
        return jnp.concatenate([w, jnp.zeros((L, w.shape[1]), w.dtype)], axis=0)

    # importance-hidden + gate, shared LHS [pt | at]
    w_hg_top = jnp.concatenate([bd(params["wi1p"]), bd(params["wgp"])], axis=1)
    w_hg_bot = jnp.concatenate([bd(params["wi1a"]), bd(params["wga"])], axis=1)
    w_hg = jnp.concatenate([w_hg_top, w_hg_bot], axis=0)            # (2L, 2L)

    # softmax(2) == sigmoid(logit diff); fold weight diff into a segmented-sum mat
    w_imp = params["wi2"][:, 0] - params["wi2"][:, 1]                # (d,)
    r_block = jnp.outer(w_imp, jnp.ones((d,), jnp.float32))          # (d, d)
    w_r = bd(r_block)

    # LayerNorm per-segment mean matrix
    w_m = bd(jnp.full((d, d), 1.0 / d, jnp.float32))

    # final fusion Linear(2d, d), shared LHS [weighted_p | weighted_a]
    w_f1 = jnp.concatenate([bd(params["wf1p"]), bd(params["wf1a"])], axis=0)

    w_slab = jnp.concatenate(
        [pad_rows(bd(params["wp"])), pad_rows(bd(params["wa"])),
         w_hg, pad_rows(w_r), w_f1, pad_rows(w_m),
         pad_rows(bd(params["wf2"]))],
        axis=1).astype(jnp.bfloat16)                                 # (2L, 8L)

    b_imp = params["bi2"][0, 0] - params["bi2"][0, 1]
    b_slab = jnp.concatenate(
        [tile_b(params["bp"]), tile_b(params["ba"]),
         tile_b(params["bi1"]), tile_b(params["bg"]),
         jnp.full((1, L), b_imp, jnp.float32),
         tile_b(params["bf1"]),
         tile_b(params["lng"]), tile_b(params["lnb"]),
         tile_b(params["bf2"])],
        axis=1).astype(jnp.float32)                                  # (1, 9L)
    return w_slab, b_slab


def adaptive_fusion(periodic_feat, aperiodic_feat, params, *, row_tile=1024):
    """periodic_feat, aperiodic_feat: (B, T, C). Returns fused (B, T, C)."""
    B, T, C = periodic_feat.shape
    assert aperiodic_feat.shape == (B, T, C)
    assert C == D_MODEL
    N = B * T

    p2d = periodic_feat.reshape(N, C)
    a2d = aperiodic_feat.reshape(N, C)

    # Pack PACK feature-rows per 128-lane row; pad so the packed row count is a
    # multiple of 8 (sublane alignment). Padded rows are pure per-row garbage
    # and are sliced off after the call.
    np_raw = pl.cdiv(N, PACK)
    NP = ((np_raw + 7) // 8) * 8
    pad_rows = NP * PACK - N
    if pad_rows:
        p2d = jnp.pad(p2d, ((0, pad_rows), (0, 0)))
        a2d = jnp.pad(a2d, ((0, pad_rows), (0, 0)))
    pp = p2d.reshape(NP, LANES)
    ap = a2d.reshape(NP, LANES)

    w_slab, b_slab = _pack_params(params, C, PACK)

    # Fixed tile + cdiv grid (no divisibility requirement). Prefer >= 4 grid
    # steps (>= 2 per v7x TensorCore) when there is enough work.
    tm = min(row_tile, NP)
    if NP >= 4 * 8 and NP // tm < 4:
        tm = ((pl.cdiv(NP, 4) + 7) // 8) * 8
    tm = max(8, (tm // 8) * 8)
    grid = (pl.cdiv(NP, tm),)

    row_spec = pl.BlockSpec((tm, LANES), lambda i: (i, 0))
    w_spec = pl.BlockSpec(w_slab.shape, lambda i: (0, 0))
    b_spec = pl.BlockSpec(b_slab.shape, lambda i: (0, 0))

    out = pl.pallas_call(
        _fusion_kernel,
        out_shape=jax.ShapeDtypeStruct((NP, LANES), periodic_feat.dtype),
        grid_spec=pltpu.PrefetchScalarGridSpec(
            num_scalar_prefetch=0,
            grid=grid,
            in_specs=[row_spec, row_spec, w_spec, b_spec],
            out_specs=row_spec,
        ),
        compiler_params=pltpu.CompilerParams(
            dimension_semantics=("parallel",),
            vmem_limit_bytes=32 * 1024 * 1024),
    )(pp, ap, w_slab, b_slab)

    out = out.reshape(NP * PACK, C)[:N]
    return out.reshape(B, T, C)


def init_params(key, d_model):
    """Deterministic synthetic parameters. Linear weights are (in, out)."""
    ks = jax.random.split(key, 16)
    s = 1.0 / jnp.sqrt(d_model)

    def w(k, shape):
        return jax.random.normal(k, shape, jnp.float32) * s

    return {
        # periodic_transform: Linear(d, d)
        "wp": w(ks[0], (d_model, d_model)),
        "bp": w(ks[1], (1, d_model)),
        # aperiodic_transform: Linear(d, d)
        "wa": w(ks[2], (d_model, d_model)),
        "ba": w(ks[3], (1, d_model)),
        # importance_evaluator: Linear(2d, d) split into periodic/aperiodic halves
        "wi1p": w(ks[4], (d_model, d_model)),
        "wi1a": w(ks[5], (d_model, d_model)),
        "bi1": w(ks[6], (1, d_model)),
        # importance_evaluator: Linear(d, 2)
        "wi2": w(ks[7], (d_model, 2)),
        "bi2": w(ks[8], (1, 2)),
        # gate: Linear(2d, d) split
        "wgp": w(ks[9], (d_model, d_model)),
        "wga": w(ks[10], (d_model, d_model)),
        "bg": w(ks[11], (1, d_model)),
        # final_fusion: Linear(2d, d) split
        "wf1p": w(ks[12], (d_model, d_model)),
        "wf1a": w(ks[13], (d_model, d_model)),
        "bf1": w(ks[14], (1, d_model)),
        # final_fusion: LayerNorm(d)
        "lng": jnp.ones((1, d_model), jnp.float32),
        "lnb": jnp.zeros((1, d_model), jnp.float32),
        # final_fusion: Linear(d, d)
        "wf2": w(ks[15], (d_model, d_model)),
        "bf2": jnp.zeros((1, d_model), jnp.float32),
    }


def adaptive_fusion_ref(periodic_feat, aperiodic_feat, params):
    """Pure-JAX f32 reference mirroring the PyTorch forward exactly."""
    pt = periodic_feat @ params["wp"] + params["bp"]
    at = aperiodic_feat @ params["wa"] + params["ba"]
    h = jax.nn.relu(pt @ params["wi1p"] + at @ params["wi1a"] + params["bi1"])
    logits = h @ params["wi2"] + params["bi2"]
    sm = jax.nn.softmax(logits, axis=-1)
    w_per, w_aper = sm[..., 0:1], sm[..., 1:2]
    g = jax.nn.sigmoid(pt @ params["wgp"] + at @ params["wga"] + params["bg"])
    wp_feat = pt * w_per * g
    wa_feat = at * w_aper * (1 - g)
    f = wp_feat @ params["wf1p"] + wa_feat @ params["wf1a"] + params["bf1"]
    mu = jnp.mean(f, axis=-1, keepdims=True)
    var = jnp.mean(jnp.square(f - mu), axis=-1, keepdims=True)
    f = (f - mu) * jax.lax.rsqrt(var + LN_EPS) * params["lng"] + params["lnb"]
    f = jax.nn.relu(f)
    return f @ params["wf2"] + params["bf2"]


if __name__ == "__main__":
    key = jax.random.PRNGKey(0)
    k_p, k_a, k_params = jax.random.split(key, 3)
    params = init_params(k_params, D_MODEL)

    # Tolerance is 5e-2 because matmul operands are bf16 (f32 accumulation).
    TOL = 5e-2

    # Primary check: B=2, T=16 (N=32 rows -> 8 packed 128-lane rows).
    B, T, C = 2, 16, D_MODEL
    periodic_feat = jax.random.normal(k_p, (B, T, C), jnp.float32)
    aperiodic_feat = jax.random.normal(k_a, (B, T, C), jnp.float32)

    fused = adaptive_fusion(periodic_feat, aperiodic_feat, params)
    fused = jax.block_until_ready(fused)
    ref = adaptive_fusion_ref(periodic_feat, aperiodic_feat, params)
    assert fused.shape == (B, T, C)
    assert jnp.allclose(fused, ref, atol=TOL, rtol=TOL), (
        float(jnp.max(jnp.abs(fused - ref))))

    # Second check exercising the row-padding path (N=26, not a multiple of 4).
    B2, T2 = 2, 13
    p2 = jax.random.normal(jax.random.PRNGKey(1), (B2, T2, C), jnp.float32)
    a2 = jax.random.normal(jax.random.PRNGKey(2), (B2, T2, C), jnp.float32)
    fused2 = jax.block_until_ready(adaptive_fusion(p2, a2, params))
    ref2 = adaptive_fusion_ref(p2, a2, params)
    assert fused2.shape == (B2, T2, C)
    assert jnp.allclose(fused2, ref2, atol=TOL, rtol=TOL), (
        float(jnp.max(jnp.abs(fused2 - ref2))))

    print("KERNEL_OK")
</pallas_src>

<mosaic_0001>
module attributes {stable_mosaic.version = 11 : i64} {
  func.func @_fusion_kernel(%arg0: i32, %arg1: memref<8x128xf32, #tpu.memory_space<vmem>>, %arg2: memref<8x128xf32, #tpu.memory_space<vmem>>, %arg3: memref<256x1024xbf16, #tpu.memory_space<vmem>>, %arg4: memref<1x1152xf32, #tpu.memory_space<vmem>>, %arg5: memref<8x128xf32, #tpu.memory_space<vmem>>) attributes {dimension_semantics = [#tpu.dimension_semantics<parallel>], iteration_bounds = array<i64: 1>, scalar_prefetch = 0 : i64, scratch_operands = 0 : i64, tpu.core_type = #tpu.core_type<tc>, window_params = [{transform_indices = @transform_0, window_bounds = array<i64: 8, 128>}, {transform_indices = @transform_1, window_bounds = array<i64: 8, 128>}, {pipeline_mode = #tpu.pipeline_mode<synchronous>, transform_indices = @transform_2, window_bounds = array<i64: 256, 1024>}, {pipeline_mode = #tpu.pipeline_mode<synchronous>, transform_indices = @transform_3, window_bounds = array<i64: 1, 1152>}, {transform_indices = @transform_4, window_bounds = array<i64: 8, 128>}]} {
    %c0 = arith.constant 0 : index
    %c0_0 = arith.constant 0 : index
    %0 = vector.load %arg1[%c0, %c0_0] : memref<8x128xf32, #tpu.memory_space<vmem>>, vector<8x128xf32>
    %c0_1 = arith.constant 0 : index
    %c0_2 = arith.constant 0 : index
    %1 = vector.load %arg2[%c0_1, %c0_2] : memref<8x128xf32, #tpu.memory_space<vmem>>, vector<8x128xf32>
    %c0_3 = arith.constant 0 : index
    %c0_4 = arith.constant 0 : index
    %2 = vector.load %arg3[%c0_3, %c0_4] : memref<256x1024xbf16, #tpu.memory_space<vmem>>, vector<128x128xbf16>
    %3 = arith.truncf %0 : vector<8x128xf32> to vector<8x128xbf16>
    %cst = arith.constant dense<0.000000e+00> : vector<8x128xf32>
    %4 = tpu.matmul %3, %2, %cst {dimension_numbers = #tpu.dot_dimension_numbers<[1], [0], [0], [1], [0, 0, 1, 1], [], []>} : vector<8x128xbf16>, vector<128x128xbf16>, vector<8x128xf32> -> vector<8x128xf32>
    %c0_5 = arith.constant 0 : index
    %c0_6 = arith.constant 0 : index
    %5 = vector.load %arg4[%c0_5, %c0_6] : memref<1x1152xf32, #tpu.memory_space<vmem>>, vector<1x128xf32>
    %6 = vector.broadcast %5 : vector<1x128xf32> to vector<8x128xf32>
    %7 = arith.addf %4, %6 : vector<8x128xf32>
    %c0_7 = arith.constant 0 : index
    %c128 = arith.constant 128 : index
    %8 = vector.load %arg3[%c0_7, %c128] : memref<256x1024xbf16, #tpu.memory_space<vmem>>, vector<128x128xbf16>
    %9 = arith.truncf %1 : vector<8x128xf32> to vector<8x128xbf16>
    %cst_8 = arith.constant dense<0.000000e+00> : vector<8x128xf32>
    %10 = tpu.matmul %9, %8, %cst_8 {dimension_numbers = #tpu.dot_dimension_numbers<[1], [0], [0], [1], [0, 0, 1, 1], [], []>} : vector<8x128xbf16>, vector<128x128xbf16>, vector<8x128xf32> -> vector<8x128xf32>
    %c0_9 = arith.constant 0 : index
    %c128_10 = arith.constant 128 : index
    %11 = vector.load %arg4[%c0_9, %c128_10] : memref<1x1152xf32, #tpu.memory_space<vmem>>, vector<1x128xf32>
    %12 = vector.broadcast %11 : vector<1x128xf32> to vector<8x128xf32>
    %13 = arith.addf %10, %12 : vector<8x128xf32>
    %14 = tpu.concatenate %7, %13 in 1 : vector<8x128xf32>, vector<8x128xf32> -> vector<8x256xf32>
    %c0_11 = arith.constant 0 : index
    %c256 = arith.constant 256 : index
    %15 = vector.load %arg3[%c0_11, %c256] : memref<256x1024xbf16, #tpu.memory_space<vmem>>, vector<256x256xbf16>
    %16 = arith.truncf %14 : vector<8x256xf32> to vector<8x256xbf16>
    %cst_12 = arith.constant dense<0.000000e+00> : vector<8x256xf32>
    %17 = tpu.matmul %16, %15, %cst_12 {dimension_numbers = #tpu.dot_dimension_numbers<[1], [0], [0], [1], [0, 0, 1, 1], [], []>} : vector<8x256xbf16>, vector<256x256xbf16>, vector<8x256xf32> -> vector<8x256xf32>
    %c0_13 = arith.constant 0 : index
    %c256_14 = arith.constant 256 : index
    %18 = vector.load %arg4[%c0_13, %c256_14] : memref<1x1152xf32, #tpu.memory_space<vmem>>, vector<1x256xf32>
    %19 = vector.broadcast %18 : vector<1x256xf32> to vector<8x256xf32>
    %20 = arith.addf %17, %19 : vector<8x256xf32>
    %21 = vector.extract_strided_slice %20 {offsets = [0, 0], sizes = [8, 128], strides = [1, 1]} : vector<8x256xf32> to vector<8x128xf32>
    %cst_15 = arith.constant 0.000000e+00 : f32
    %22 = vector.broadcast %cst_15 : f32 to vector<8x128xf32>
    %23 = arith.maximumf %21, %22 : vector<8x128xf32>
    %24 = vector.extract_strided_slice %20 {offsets = [0, 128], sizes = [8, 128], strides = [1, 1]} : vector<8x256xf32> to vector<8x128xf32>
    %25 = arith.negf %24 : vector<8x128xf32>
    %26 = math.exp %25 : vector<8x128xf32>
    %cst_16 = arith.constant 1.000000e+00 : f32
    %27 = vector.broadcast %cst_16 : f32 to vector<8x128xf32>
    %28 = arith.addf %27, %26 : vector<8x128xf32>
    %29 = arith.divf %27, %28 : vector<8x128xf32>
    %c0_17 = arith.constant 0 : index
    %c512 = arith.constant 512 : index
    %30 = vector.load %arg3[%c0_17, %c512] : memref<256x1024xbf16, #tpu.memory_space<vmem>>, vector<128x128xbf16>
    %31 = arith.truncf %23 : vector<8x128xf32> to vector<8x128xbf16>
    %cst_18 = arith.constant dense<0.000000e+00> : vector<8x128xf32>
    %32 = tpu.matmul %31, %30, %cst_18 {dimension_numbers = #tpu.dot_dimension_numbers<[1], [0], [0], [1], [0, 0, 1, 1], [], []>} : vector<8x128xbf16>, vector<128x128xbf16>, vector<8x128xf32> -> vector<8x128xf32>
    %c0_19 = arith.constant 0 : index
    %c512_20 = arith.constant 512 : index
    %33 = vector.load %arg4[%c0_19, %c512_20] : memref<1x1152xf32, #tpu.memory_space<vmem>>, vector<1x128xf32>
    %34 = vector.broadcast %33 : vector<1x128xf32> to vector<8x128xf32>
    %35 = arith.addf %32, %34 : vector<8x128xf32>
    %36 = arith.negf %35 : vector<8x128xf32>
    %37 = math.exp %36 : vector<8x128xf32>
    %cst_21 = arith.constant 1.000000e+00 : f32
    %38 = vector.broadcast %cst_21 : f32 to vector<8x128xf32>
    %39 = arith.addf %38, %37 : vector<8x128xf32>
    %40 = arith.divf %38, %39 : vector<8x128xf32>
    %cst_22 = arith.constant 1.000000e+00 : f32
    %41 = vector.broadcast %cst_22 : f32 to vector<8x128xf32>
    %42 = arith.subf %41, %40 : vector<8x128xf32>
    %cst_23 = arith.constant 1.000000e+00 : f32
    %43 = vector.broadcast %cst_23 : f32 to vector<8x128xf32>
    %44 = arith.subf %43, %29 : vector<8x128xf32>
    %45 = arith.mulf %40, %29 : vector<8x128xf32>
    %46 = arith.mulf %7, %45 : vector<8x128xf32>
    %47 = arith.mulf %42, %44 : vector<8x128xf32>
    %48 = arith.mulf %13, %47 : vector<8x128xf32>
    %49 = tpu.concatenate %46, %48 in 1 : vector<8x128xf32>, vector<8x128xf32> -> vector<8x256xf32>
    %c0_24 = arith.constant 0 : index
    %c640 = arith.constant 640 : index
    %50 = vector.load %arg3[%c0_24, %c640] : memref<256x1024xbf16, #tpu.memory_space<vmem>>, vector<256x128xbf16>
    %51 = arith.truncf %49 : vector<8x256xf32> to vector<8x256xbf16>
    %cst_25 = arith.constant dense<0.000000e+00> : vector<8x128xf32>
    %52 = tpu.matmul %51, %50, %cst_25 {dimension_numbers = #tpu.dot_dimension_numbers<[1], [0], [0], [1], [0, 0, 1, 1], [], []>} : vector<8x256xbf16>, vector<256x128xbf16>, vector<8x128xf32> -> vector<8x128xf32>
    %c0_26 = arith.constant 0 : index
    %c640_27 = arith.constant 640 : index
    %53 = vector.load %arg4[%c0_26, %c640_27] : memref<1x1152xf32, #tpu.memory_space<vmem>>, vector<1x128xf32>
    %54 = vector.broadcast %53 : vector<1x128xf32> to vector<8x128xf32>
    %55 = arith.addf %52, %54 : vector<8x128xf32>
    %c0_28 = arith.constant 0 : index
    %c768 = arith.constant 768 : index
    %56 = vector.load %arg3[%c0_28, %c768] : memref<256x1024xbf16, #tpu.memory_space<vmem>>, vector<128x128xbf16>
    %57 = arith.truncf %55 : vector<8x128xf32> to vector<8x128xbf16>
    %cst_29 = arith.constant dense<0.000000e+00> : vector<8x128xf32>
    %58 = tpu.matmul %57, %56, %cst_29 {dimension_numbers = #tpu.dot_dimension_numbers<[1], [0], [0], [1], [0, 0, 1, 1], [], []>} : vector<8x128xbf16>, vector<128x128xbf16>, vector<8x128xf32> -> vector<8x128xf32>
    %59 = arith.subf %55, %58 : vector<8x128xf32>
    %60 = arith.mulf %59, %59 : vector<8x128xf32>
    %61 = arith.truncf %60 : vector<8x128xf32> to vector<8x128xbf16>
    %cst_30 = arith.constant dense<0.000000e+00> : vector<8x128xf32>
    %62 = tpu.matmul %61, %56, %cst_30 {dimension_numbers = #tpu.dot_dimension_numbers<[1], [0], [0], [1], [0, 0, 1, 1], [], []>} : vector<8x128xbf16>, vector<128x128xbf16>, vector<8x128xf32> -> vector<8x128xf32>
    %cst_31 = arith.constant 9.99999974E-6 : f32
    %63 = vector.broadcast %cst_31 : f32 to vector<8x128xf32>
    %64 = arith.addf %62, %63 : vector<8x128xf32>
    %65 = math.rsqrt %64 : vector<8x128xf32>
    %66 = arith.mulf %59, %65 : vector<8x128xf32>
    %c0_32 = arith.constant 0 : index
    %c768_33 = arith.constant 768 : index
    %67 = vector.load %arg4[%c0_32, %c768_33] : memref<1x1152xf32, #tpu.memory_space<vmem>>, vector<1x128xf32>
    %68 = vector.broadcast %67 : vector<1x128xf32> to vector<8x128xf32>
    %69 = arith.mulf %66, %68 : vector<8x128xf32>
    %c0_34 = arith.constant 0 : index
    %c896 = arith.constant 896 : index
    %70 = vector.load %arg4[%c0_34, %c896] : memref<1x1152xf32, #tpu.memory_space<vmem>>, vector<1x128xf32>
    %71 = vector.broadcast %70 : vector<1x128xf32> to vector<8x128xf32>
    %72 = arith.addf %69, %71 : vector<8x128xf32>
    %cst_35 = arith.constant 0.000000e+00 : f32
    %73 = vector.broadcast %cst_35 : f32 to vector<8x128xf32>
    %74 = arith.maximumf %72, %73 : vector<8x128xf32>
    %c0_36 = arith.constant 0 : index
    %c896_37 = arith.constant 896 : index
    %75 = vector.load %arg3[%c0_36, %c896_37] : memref<256x1024xbf16, #tpu.memory_space<vmem>>, vector<128x128xbf16>
    %76 = arith.truncf %74 : vector<8x128xf32> to vector<8x128xbf16>
    %cst_38 = arith.constant dense<0.000000e+00> : vector<8x128xf32>
    %77 = tpu.matmul %76, %75, %cst_38 {dimension_numbers = #tpu.dot_dimension_numbers<[1], [0], [0], [1], [0, 0, 1, 1], [], []>} : vector<8x128xbf16>, vector<128x128xbf16>, vector<8x128xf32> -> vector<8x128xf32>
    %c0_39 = arith.constant 0 : index
    %c1024 = arith.constant 1024 : index
    %78 = vector.load %arg4[%c0_39, %c1024] : memref<1x1152xf32, #tpu.memory_space<vmem>>, vector<1x128xf32>
    %79 = vector.broadcast %78 : vector<1x128xf32> to vector<8x128xf32>
    %80 = arith.addf %77, %79 : vector<8x128xf32>
    %c0_40 = arith.constant 0 : index
    %c0_41 = arith.constant 0 : index
    %81 = vector.load %arg5[%c0_40, %c0_41] : memref<8x128xf32, #tpu.memory_space<vmem>>, vector<8x128xf32>
    tpu.vector_store %arg5[%c0_40, %c0_41], %80 {strides = array<i32>} : memref<8x128xf32, #tpu.memory_space<vmem>>, vector<8x128xf32>,
    return
  }
  func.func @transform_0(%arg0: i32) -> (i32, i32) {
    %c0_i32 = arith.constant 0 : i32
    %c0_i32_0 = arith.constant 0 : i32
    return %arg0, %c0_i32 : i32, i32
  }
  func.func @transform_1(%arg0: i32) -> (i32, i32) {
    %c0_i32 = arith.constant 0 : i32
    %c0_i32_0 = arith.constant 0 : i32
    return %arg0, %c0_i32 : i32, i32
  }
  func.func @transform_2(%arg0: i32) -> (i32, i32) {
    %c0_i32 = arith.constant 0 : i32
    %c0_i32_0 = arith.constant 0 : i32
    %c0_i32_1 = arith.constant 0 : i32
    return %c0_i32, %c0_i32_0 : i32, i32
  }
  func.func @transform_3(%arg0: i32) -> (i32, i32) {
    %c0_i32 = arith.constant 0 : i32
    %c0_i32_0 = arith.constant 0 : i32
    %c0_i32_1 = arith.constant 0 : i32
    return %c0_i32, %c0_i32_0 : i32, i32
  }
  func.func @transform_4(%arg0: i32) -> (i32, i32) {
    %c0_i32 = arith.constant 0 : i32
    %c0_i32_0 = arith.constant 0 : i32
    return %arg0, %c0_i32 : i32, i32
  }
}

</mosaic_0001>

<bundles_post_ra>
// kernel: tpu_custom_call.1
= control target key start
LH: loop header
LB: loop body
LE: loop exit
PB: predicated region body
PF: predicated region fallthrough
CT: control target
= control target key end

     0   :  { %9 = vsyncpa [#allocation3], 0  ;;  %s1724_s0 = inlined_call_operand.hbm [shape: f32[8,128], index: 0, kind: input, shape index: {}]   ;;  %s1725_s1 = inlined_call_operand.hbm [shape: f32[8,128], index: 1, kind: input, shape index: {}]   ;;  %s1726_s2 = inlined_call_operand.hbm [shape: bf16[256,1024], index: 2, kind: input, shape index: {}]   ;;  %s1727_s3 = inlined_call_operand.vmem [shape: f32[1,1152], index: 3, kind: input, shape index: {}]   ;;  %s1728_s4 = inlined_call_operand.hbm [shape: f32[8,128], index: 4, kind: output, shape index: {}]  }
   0x1   :  { %10 = vsyncpa [#allocation6], 0 }
   0x2   :  { %11 = vsyncpa [#allocation4], 0  ;;  %s1538_s15 = smov [#allocation5]   ;;  %s1539_s17 = smov [#allocation2]  }
   0x3   :  { %s28_s16 = sshll.u32 %s1538_s15, 4  ;;  %s18_s18 = sshll.u32 %s1539_s17, 4  ;;  %s29_s16 = int_to_ptr.vmem [resolvable:$true] %s28_s16  ;;  %s19_s18 = int_to_ptr.vmem [resolvable:$true] %s18_s18 }
   0x4   :  { %s1444_s21 = scalar_lea.hbm %s1725_s1, 128 }
   0x5   :  { %p1445_p0 = scmp.ne.s32.totalorder %s1725_s1, %s1444_s21  ;;  %p1448_p1 = scmp.lt.u32.totalorder %s1444_s21, %s1725_s1 }
   0x7   :  { %p1450_p2 = pnand %p1448_p1, %p1445_p0 }
   0x9   :  { %1453 = shalt.err (!%p1450_p2)
}
   0xa   :  { %s1454_s26 = scalar_lea.vmem %s29_s16, 128  ;;  %p1459_p4 = scmp.lt.s32.totalorder %s29_s16, %s29_s16 }
   0xb   :  { %p1455_p3 = scmp.ne.s32.totalorder %s29_s16, %s1454_s26  ;;  %p1460_p5 = scmp.lt.s32.totalorder %s1454_s26, %s1454_s26 }
   0xd   :  { %p1461_p6 = por %p1460_p5, %p1459_p4 }
   0xf   :  { %p1462_p7 = pnand %p1461_p6, %p1455_p3 }
  0x11   :  { %1465 = shalt.err (!%p1462_p7)
}
  0x12   :  { %31 = dma.hbm_to_vmem [thread:$0]  %s1725_s1, 128, %s29_s16, [#allocation6]  }
  0x13   :  { %s1466_s5 = scalar_lea.hbm %s1724_s0, 128 }
  0x14   :  { %p1467_p8 = scmp.ne.s32.totalorder %s1724_s0, %s1466_s5  ;;  %p1470_p9 = scmp.lt.u32.totalorder %s1466_s5, %s1724_s0 }
  0x16   :  { %p1472_p10 = pnand %p1470_p9, %p1467_p8 }
  0x18   :  { %1475 = shalt.err (!%p1472_p10)
}
  0x19   :  { %s1476_s10 = scalar_lea.vmem %s19_s18, 128  ;;  %p1481_p12 = scmp.lt.s32.totalorder %s19_s18, %s19_s18 }
  0x1a   :  { %p1477_p11 = scmp.ne.s32.totalorder %s19_s18, %s1476_s10  ;;  %p1482_p13 = scmp.lt.s32.totalorder %s1476_s10, %s1476_s10 }
  0x1c   :  { %p1483_p0 = por %p1482_p13, %p1481_p12 }
  0x1e   :  { %p1484_p1 = pnand %p1483_p0, %p1477_p11 }
  0x20   :  { %1487 = shalt.err (!%p1484_p1)
}
  0x21   :  { %21 = dma.hbm_to_vmem [thread:$0]  %s1724_s0, 128, %s19_s18, [#allocation3]  }
  0x22   :  { %s1540_s12 = smov [#allocation7]   ;;  %s1488_s16 = scalar_lea.hbm %s1726_s2, 16384 }
  0x23   :  { %s37_s13 = sshll.u32 %s1540_s12, 4  ;;  %p1489_p2 = scmp.ne.s32.totalorder %s1726_s2, %s1488_s16  ;;  %s38_s13 = int_to_ptr.vmem [resolvable:$true] %s37_s13 }
  0x24   :  { %p1492_p3 = scmp.lt.u32.totalorder %s1488_s16, %s1726_s2 }
  0x26   :  { %p1494_p4 = pnand %p1492_p3, %p1489_p2 }
  0x28   :  { %1497 = shalt.err (!%p1494_p4)
}
  0x29   :  { %s1498_s22 = scalar_lea.vmem %s38_s13, 16384  ;;  %p1503_p6 = scmp.lt.s32.totalorder %s38_s13, %s38_s13 }
  0x2a   :  { %p1499_p5 = scmp.ne.s32.totalorder %s38_s13, %s1498_s22  ;;  %p1504_p7 = scmp.lt.s32.totalorder %s1498_s22, %s1498_s22 }
  0x2c   :  { %p1505_p8 = por %p1504_p7, %p1503_p6 }
  0x2e   :  { %p1506_p9 = pnand %p1505_p8, %p1499_p5 }
  0x30   :  { %1509 = shalt.err (!%p1506_p9)
}
  0x31   :  { %s1541_s0 = smov 512   ;;  %s1542_s18 = smov 32  }
  0x32   :  { %43 = dma.hbm_to_vmem [thread:$0]  %s1726_s2, 16384, %s38_s13, [#allocation6], %s1541_s0, %s1541_s0, %s1542_s18  }
  0x33   :  { %1532 = dma.done.wait [#allocation3], 128  }
  0x34   :  { %1533 = vsyncadd [#allocation3], 4294967168 }
  0x35   :  { %1534 = dma.done.wait [#allocation6], 16512  }
  0x36   :  { %1535 = vsyncadd [#allocation6], 4294950784  ;;  %v1543_v0 = vmov 0.0   ;;  %vm1544_vm0 = vmmov 0   ;;  %v58_v1 = vld [vmem:[#allocation7] sm:$0xf] }
  0x37   :  { %1306 = vmatprep.subr.bf16.mxu0 %v1543_v0  ;;  %1326 = vmatprep.subr.bf16.mxu1 %v1543_v0  ;;  %v59_v2 = vld [vmem:[#allocation7 + $0x20] sm:$0xf]  ;;  %v170_v3 = vld [vmem:[#allocation7 + $0x4] sm:$0xf]  ;;  %v282_v47 = vld [vmem:[#allocation7 + $0x8] sm:$0xff]  ;;  %s1545_s13 = smov [#allocation8]  }
  0x38   :  { %1322 = vmatprep.mubr.msk.bf16.mxu0 %vm1544_vm0, %v1543_v0  ;;  %1342 = vmatprep.mubr.msk.bf16.mxu1 %vm1544_vm0, %v1543_v0  ;;  %v1134_v4 = vcombine.low %v58_v1, %v59_v2  ;;  %v171_v5 = vld [vmem:[#allocation7 + $0x24] sm:$0xf]  ;;  %v60_v6 = vld [vmem:[#allocation7 + $0x40] sm:$0xf]  ;;  %v283_v48 = vld [vmem:[#allocation7 + $0x28] sm:$0xff]  ;;  %s1123_s14 = sshll.u32 %s1545_s13, 4  ;;  %s1124_s14 = int_to_ptr.vmem [resolvable:$true] %s1123_s14 }
  0x39   :  { %v61_v7 = vld [vmem:[#allocation7 + $0x60] sm:$0xf]  ;;  %v1143_v8 = vcombine.low %v170_v3, %v171_v5  ;;  %v172_v9 = vld [vmem:[#allocation7 + $0x44] sm:$0xf]  ;;  %v56_v50 = vld [vmem:[#allocation2] sm:$0xff]  ;;  %v1152_v53 = vcombine.high %v282_v47, %v283_v48  ;;  %v1151_v58 = vcombine.low %v282_v47, %v283_v48  ;;  %s1510_s15 = scalar_lea.vmem %s1124_s14, 128  ;;  %p1515_p11 = scmp.lt.s32.totalorder %s1124_s14, %s1124_s14 }
  0x3a   :  { %v173_v10 = vld [vmem:[#allocation7 + $0x64] sm:$0xf]  ;;  %1307 = vmatpush3.bf16.msra.mxu0 %v1134_v4  ;;  %v1135_v11 = vcombine.low %v60_v6, %v61_v7  ;;  %v62_v13 = vld [vmem:[#allocation7 + $0x80] sm:$0xf]  ;;  %v57_v52 = vld [vmem:[#allocation5] sm:$0xff]  ;;  %v74_v56 = vpack.c.bf16 %v56_v50, %v56_v50  ;;  %p1511_p10 = scmp.ne.s32.totalorder %s1124_s14, %s1510_s15  ;;  %p1516_p12 = scmp.lt.s32.totalorder %s1510_s15, %s1510_s15 }
  0x3b   :  { %1327 = vmatpush3.bf16.msra.mxu1 %v1143_v8  ;;  %1308 = vmatprep.subr.bf16.mxu0 %v1543_v0  ;;  %v1144_v12 = vcombine.low %v172_v9, %v173_v10  ;;  %v63_v14 = vld [vmem:[#allocation7 + $0xa0] sm:$0xf]  ;;  %v174_v15 = vld [vmem:[#allocation7 + $0x84] sm:$0xf]  ;;  %v284_v54 = vld [vmem:[#allocation7 + $0x48] sm:$0xff]  ;;  %v186_v57 = vpack.c.bf16 %v57_v52, %v57_v52 }
  0x3c   :  { %1328 = vmatprep.subr.bf16.mxu1 %v1543_v0  ;;  %v175_v16 = vld [vmem:[#allocation7 + $0xa4] sm:$0xf]  ;;  %v1136_v17 = vcombine.low %v62_v13, %v63_v14  ;;  %v64_v19 = vld [vmem:[#allocation7 + $0xc0] sm:$0xf]  ;;  %v285_v55 = vld [vmem:[#allocation7 + $0x68] sm:$0xff]  ;;  %p1517_p13 = por %p1516_p12, %p1515_p11 }
  0x3d   :  { %v1145_v18 = vcombine.low %v174_v15, %v175_v16  ;;  %v65_v20 = vld [vmem:[#allocation7 + $0xe0] sm:$0xf]  ;;  %v176_v21 = vld [vmem:[#allocation7 + $0xc4] sm:$0xf]  ;;  %v1154_v59 = vcombine.high %v284_v54, %v285_v55  ;;  %v286_v60 = vld [vmem:[#allocation7 + $0x88] sm:$0xff]  ;;  %v1153_v62 = vcombine.low %v284_v54, %v285_v55 }
  0x3e   :  { %1309 = vmatpush3.bf16.msra.mxu0 %v1135_v11  ;;  %v177_v22 = vld [vmem:[#allocation7 + $0xe4] sm:$0xf]  ;;  %v1137_v23 = vcombine.low %v64_v19, %v65_v20  ;;  %v66_v25 = vld [vmem:[#allocation7 + $0x100] sm:$0xf]  ;;  %v287_v61 = vld [vmem:[#allocation7 + $0xa8] sm:$0xff]  ;;  %p1518_p0 = pnand %p1517_p13, %p1511_p10 }
  0x3f   :  { %1329 = vmatpush3.bf16.msra.mxu1 %v1144_v12  ;;  %1310 = vmatprep.subr.bf16.mxu0 %v1543_v0  ;;  %v1146_v24 = vcombine.low %v176_v21, %v177_v22  ;;  %v67_v26 = vld [vmem:[#allocation7 + $0x120] sm:$0xf]  ;;  %v178_v27 = vld [vmem:[#allocation7 + $0x104] sm:$0xf]  ;;  %v1156_v63 = vcombine.high %v286_v60, %v287_v61  ;;  %v288_v1 = vld [vmem:[#allocation7 + $0xc8] sm:$0xff]  ;;  %v1155_v3 = vcombine.low %v286_v60, %v287_v61 }
  0x40   :  { %1330 = vmatprep.subr.bf16.mxu1 %v1543_v0  ;;  %v179_v28 = vld [vmem:[#allocation7 + $0x124] sm:$0xf]  ;;  %v1138_v29 = vcombine.low %v66_v25, %v67_v26  ;;  %v68_v31 = vld [vmem:[#allocation7 + $0x140] sm:$0xf]  ;;  %v289_v2 = vld [vmem:[#allocation7 + $0xe8] sm:$0xff] }
  0x41   :  { %v1147_v30 = vcombine.low %v178_v27, %v179_v28  ;;  %v69_v32 = vld [vmem:[#allocation7 + $0x160] sm:$0xf]  ;;  %v180_v33 = vld [vmem:[#allocation7 + $0x144] sm:$0xf]  ;;  %v1158_v4 = vcombine.high %v288_v1, %v289_v2  ;;  %v290_v5 = vld [vmem:[#allocation7 + $0x108] sm:$0xff]  ;;  %v1157_v7 = vcombine.low %v288_v1, %v289_v2 }
  0x42   :  { %1311 = vmatpush3.bf16.msra.mxu0 %v1136_v17  ;;  %v181_v34 = vld [vmem:[#allocation7 + $0x164] sm:$0xf]  ;;  %v1139_v35 = vcombine.low %v68_v31, %v69_v32  ;;  %v70_v37 = vld [vmem:[#allocation7 + $0x180] sm:$0xf]  ;;  %v291_v6 = vld [vmem:[#allocation7 + $0x128] sm:$0xff] }
  0x43   :  { %1331 = vmatpush3.bf16.msra.mxu1 %v1145_v18  ;;  %1312 = vmatprep.subr.bf16.mxu0 %v1543_v0  ;;  %v1148_v36 = vcombine.low %v180_v33, %v181_v34  ;;  %v71_v38 = vld [vmem:[#allocation7 + $0x1a0] sm:$0xf]  ;;  %v182_v39 = vld [vmem:[#allocation7 + $0x184] sm:$0xf]  ;;  %v1160_v8 = vcombine.high %v290_v5, %v291_v6  ;;  %v292_v9 = vld [vmem:[#allocation7 + $0x148] sm:$0xff]  ;;  %v1159_v11 = vcombine.low %v290_v5, %v291_v6 }
  0x44   :  { %1332 = vmatprep.subr.bf16.mxu1 %v1543_v0  ;;  %v183_v40 = vld [vmem:[#allocation7 + $0x1a4] sm:$0xf]  ;;  %v1140_v41 = vcombine.low %v70_v37, %v71_v38  ;;  %v72_v43 = vld [vmem:[#allocation7 + $0x1c0] sm:$0xf]  ;;  %v293_v10 = vld [vmem:[#allocation7 + $0x168] sm:$0xff] }
  0x45   :  { %v1149_v42 = vcombine.low %v182_v39, %v183_v40  ;;  %v73_v44 = vld [vmem:[#allocation7 + $0x1e0] sm:$0xf]  ;;  %v184_v45 = vld [vmem:[#allocation7 + $0x1c4] sm:$0xf]  ;;  %v1162_v12 = vcombine.high %v292_v9, %v293_v10  ;;  %v294_v13 = vld [vmem:[#allocation7 + $0x188] sm:$0xff]  ;;  %v1161_v15 = vcombine.low %v292_v9, %v293_v10 }
  0x46   :  { %1313 = vmatpush3.bf16.msra.mxu0 %v1137_v23  ;;  %v185_v46 = vld [vmem:[#allocation7 + $0x1e4] sm:$0xf]  ;;  %v1141_v49 = vcombine.low %v72_v43, %v73_v44  ;;  %v295_v14 = vld [vmem:[#allocation7 + $0x1a8] sm:$0xff]  ;;  %v536_v54 = vld [vmem:[#allocation7 + $0x10] sm:$0xf] }
  0x47   :  { %1333 = vmatpush3.bf16.msra.mxu1 %v1146_v24  ;;  %1314 = vmatprep.subr.bf16.mxu0 %v1543_v0  ;;  %v1150_v51 = vcombine.low %v184_v45, %v185_v46  ;;  %v1164_v16 = vcombine.high %v294_v13, %v295_v14  ;;  %v296_v17 = vld [vmem:[#allocation7 + $0x1c8] sm:$0xff]  ;;  %v1163_v19 = vcombine.low %v294_v13, %v295_v14  ;;  %v537_v55 = vld [vmem:[#allocation7 + $0x30] sm:$0xf]  ;;  %v1133_v9 = vld [vmem:[%s1727_s3] ss:$0 sm:$0xff] }
  0x48   :  { %1334 = vmatprep.subr.bf16.mxu1 %v1543_v0  ;;  %v297_v18 = vld [vmem:[#allocation7 + $0x1e8] sm:$0xff]  ;;  %v540_v60 = vld [vmem:[#allocation7 + $0x90] sm:$0xf]  ;;  %v1142_v10 = vld [vmem:[%s1727_s3 + $0x1] ss:$0 sm:$0xff] }
  0x49   :  { %v1166_v20 = vcombine.high %v296_v17, %v297_v18  ;;  %v298_v21 = vld [vmem:[#allocation7 + $0x208] sm:$0xff]  ;;  %v1165_v23 = vcombine.low %v296_v17, %v297_v18  ;;  %v541_v61 = vld [vmem:[#allocation7 + $0xb0] sm:$0xf] }
  0x4a   :  { %1315 = vmatpush3.bf16.msra.mxu0 %v1138_v29  ;;  %v299_v22 = vld [vmem:[#allocation7 + $0x228] sm:$0xff]  ;;  %v543_v1 = vld [vmem:[#allocation7 + $0xf0] sm:$0xf] }
  0x4b   :  { %1335 = vmatpush3.bf16.msra.mxu1 %v1147_v30  ;;  %1316 = vmatprep.subr.bf16.mxu0 %v1543_v0  ;;  %v1168_v24 = vcombine.high %v298_v21, %v299_v22  ;;  %v300_v25 = vld [vmem:[#allocation7 + $0x248] sm:$0xff]  ;;  %v1167_v27 = vcombine.low %v298_v21, %v299_v22  ;;  %v546_v6 = vld [vmem:[#allocation7 + $0x150] sm:$0xf] }
  0x4c   :  { %1336 = vmatprep.subr.bf16.mxu1 %v1543_v0  ;;  %v301_v26 = vld [vmem:[#allocation7 + $0x268] sm:$0xff] }
  0x4d   :  { %v1170_v28 = vcombine.high %v300_v25, %v301_v26  ;;  %v302_v29 = vld [vmem:[#allocation7 + $0x288] sm:$0xff]  ;;  %v1169_v31 = vcombine.low %v300_v25, %v301_v26  ;;  %v550_v26 = vld [vmem:[#allocation7 + $0x1d0] sm:$0xf] }
  0x4e   :  { %1317 = vmatpush3.bf16.msra.mxu0 %v1139_v35  ;;  %v303_v30 = vld [vmem:[#allocation7 + $0x2a8] sm:$0xff] }
  0x4f   :  { %1337 = vmatpush3.bf16.msra.mxu1 %v1148_v36  ;;  %1318 = vmatprep.subr.bf16.mxu0 %v1543_v0  ;;  %v1172_v32 = vcombine.high %v302_v29, %v303_v30  ;;  %v304_v33 = vld [vmem:[#allocation7 + $0x2c8] sm:$0xff]  ;;  %v1171_v35 = vcombine.low %v302_v29, %v303_v30  ;;  %v318_v29 = vlaneseq }
  0x50   :  { %1338 = vmatprep.subr.bf16.mxu1 %v1543_v0  ;;  %v305_v34 = vld [vmem:[#allocation7 + $0x2e8] sm:$0xff] }
  0x51   :  { %v1174_v36 = vcombine.high %v304_v33, %v305_v34  ;;  %v306_v37 = vld [vmem:[#allocation7 + $0x308] sm:$0xff]  ;;  %v1173_v39 = vcombine.low %v304_v33, %v305_v34  ;;  %v1654_v30 = vshrl.u32 %v318_v29, 7  ;;  %v838_v29 = vld [vmem:[#allocation7 + $0x38] sm:$0xf] }
  0x52   :  { %1319 = vmatpush3.bf16.msra.mxu0 %v1140_v41  ;;  %v307_v38 = vld [vmem:[#allocation7 + $0x328] sm:$0xff] }
  0x53   :  { %1339 = vmatpush3.bf16.msra.mxu1 %v1149_v42  ;;  %1320 = vmatprep.subr.bf16.mxu0 %v1543_v0  ;;  %v1176_v40 = vcombine.high %v306_v37, %v307_v38  ;;  %v308_v41 = vld [vmem:[#allocation7 + $0x348] sm:$0xff]  ;;  %v1175_v43 = vcombine.low %v306_v37, %v307_v38 }
  0x54   :  { %1340 = vmatprep.subr.bf16.mxu1 %v1543_v0  ;;  %v309_v42 = vld [vmem:[#allocation7 + $0x368] sm:$0xff] }
  0x55   :  { %v1178_v44 = vcombine.high %v308_v41, %v309_v42  ;;  %v310_v45 = vld [vmem:[#allocation7 + $0x388] sm:$0xff]  ;;  %v1177_v47 = vcombine.low %v308_v41, %v309_v42  ;;  %v676_v41 = vld [vmem:[#allocation7 + $0x214] sm:$0xf] }
  0x56   :  { %1321 = vmatpush3.bf16.msra.mxu0 %v1141_v49  ;;  %v311_v46 = vld [vmem:[#allocation7 + $0x3a8] sm:$0xff]  ;;  %v677_v42 = vld [vmem:[#allocation7 + $0x234] sm:$0xf] }
  0x57   :  { %1341 = vmatpush3.bf16.msra.mxu1 %v1150_v51  ;;  %488 = vmatprep.subr.bf16.mxu0 %v1152_v53  ;;  %v1180_v48 = vcombine.high %v310_v45, %v311_v46  ;;  %v1179_v49 = vcombine.low %v310_v45, %v311_v46  ;;  %v312_v50 = vld [vmem:[#allocation7 + $0x3c8] sm:$0xff]  ;;  %v661_v45 = vld [vmem:[#allocation7 + $0x34] sm:$0xf] }
  0x58   :  { %1346 = vmatprep.subr.bf16.mxu1 %v1543_v0  ;;  %v313_v51 = vld [vmem:[#allocation7 + $0x3e8] sm:$0xff] }
  0x59   :  { %1323 = vmatmul.mubr.bf16.vlgmr.msra.gmra.mrb[0].mxu0 %v74_v56  ;;  %v1182_v52 = vcombine.high %v312_v50, %v313_v51  ;;  %v1181_v53 = vcombine.low %v312_v50, %v313_v51  ;;  %v538_v56 = vld [vmem:[#allocation7 + $0x50] sm:$0xf]  ;;  %v662_v50 = vld [vmem:[#allocation7 + $0x54] sm:$0xf] }
  0x5a   :  { %1343 = vmatmul.mubr.bf16.vlgmr.msra.gmra.mrb[0].mxu1 %v186_v57  ;;  %489 = vmatpush1.bf16.msra.mxu0 %v1151_v58  ;;  %v1185_v57 = vcombine.low %v536_v54, %v537_v55  ;;  %v539_v58 = vld [vmem:[#allocation7 + $0x70] sm:$0xf]  ;;  %v663_v51 = vld [vmem:[#allocation7 + $0x74] sm:$0xf] }
  0x5b   :  { %490 = vmatprep.subr.bf16.mxu0 %v1154_v59  ;;  %1362 = vmatprep.mubr.msk.bf16.mxu1 %vm1544_vm0, %v1543_v0  ;;  %v1186_v59 = vcombine.low %v538_v56, %v539_v58  ;;  %v681_v54 = vld [vmem:[#allocation7 + $0x2b4] sm:$0xf] }
  0x5c   :  { %1347 = vmatpush3.bf16.msra.mxu1 %v1185_v57  ;;  %v664_v56 = vld [vmem:[#allocation7 + $0x94] sm:$0xf] }
  0x5d   :  { %1348 = vmatprep.subr.bf16.mxu1 %v1543_v0  ;;  %v665_v57 = vld [vmem:[#allocation7 + $0xb4] sm:$0xf] }
  0x5e   :  { %491 = vmatpush1.bf16.msra.mxu0 %v1153_v62  ;;  %v1187_v62 = vcombine.low %v540_v60, %v541_v61  ;;  %v1197_v58 = vcombine.low %v664_v56, %v665_v57  ;;  %v683_v60 = vld [vmem:[#allocation7 + $0x2f4] sm:$0xf] }
  0x5f   :  { %492 = vmatprep.subr.bf16.mxu0 %v1156_v63  ;;  %v542_v63 = vld [vmem:[#allocation7 + $0xd0] sm:$0xf] }
  0x60   :  { %1349 = vmatpush3.bf16.msra.mxu1 %v1186_v59  ;;  %v1188_v2 = vcombine.low %v542_v63, %v543_v1  ;;  %v682_v59 = vld [vmem:[#allocation7 + $0x2d4] sm:$0xf] }
  0x61   :  { %1350 = vmatprep.subr.bf16.mxu1 %v1543_v0  ;;  %v1206_v61 = vcombine.low %v682_v59, %v683_v60  ;;  %v667_v63 = vld [vmem:[#allocation7 + $0xf4] sm:$0xf] }
  0x62   :  { %493 = vmatpush1.bf16.msra.mxu0 %v1155_v3  ;;  %v544_v3 = vld [vmem:[#allocation7 + $0x110] sm:$0xf] }
  0x63   :  { %494 = vmatprep.subr.bf16.mxu0 %v1158_v4  ;;  %v545_v4 = vld [vmem:[#allocation7 + $0x130] sm:$0xf] }
  0x64   :  { %1351 = vmatpush3.bf16.msra.mxu1 %v1187_v62  ;;  %v1189_v5 = vcombine.low %v544_v3, %v545_v4  ;;  %v666_v62 = vld [vmem:[#allocation7 + $0xd4] sm:$0xf] }
  0x65   :  { %1352 = vmatprep.subr.bf16.mxu1 %v1543_v0  ;;  %v1198_v1 = vcombine.low %v666_v62, %v667_v63  ;;  %v685_v3 = vld [vmem:[#allocation7 + $0x334] sm:$0xf] }
  0x66   :  { %495 = vmatpush1.bf16.msra.mxu0 %v1157_v7  ;;  %v547_v7 = vld [vmem:[#allocation7 + $0x170] sm:$0xf]  ;;  %v668_v4 = vld [vmem:[#allocation7 + $0x114] sm:$0xf] }
  0x67   :  { %496 = vmatprep.subr.bf16.mxu0 %v1160_v8  ;;  %v1190_v8 = vcombine.low %v546_v6, %v547_v7  ;;  %v669_v6 = vld [vmem:[#allocation7 + $0x134] sm:$0xf] }
  0x68   :  { %1353 = vmatpush3.bf16.msra.mxu1 %v1188_v2  ;;  %v684_v2 = vld [vmem:[#allocation7 + $0x314] sm:$0xf] }
  0x69   :  { %1354 = vmatprep.subr.bf16.mxu1 %v1543_v0  ;;  %v686_v7 = vld [vmem:[#allocation7 + $0x354] sm:$0xf] }
  0x6a   :  { %497 = vmatpush1.bf16.msra.mxu0 %v1159_v11 }
  0x6b   :  { %498 = vmatprep.subr.bf16.mxu0 %v1162_v12 }
  0x6c   :  { %1355 = vmatpush3.bf16.msra.mxu1 %v1189_v5  ;;  %v1207_v5 = vcombine.low %v684_v2, %v685_v3 }
  0x6d   :  { %1356 = vmatprep.subr.bf16.mxu1 %v1543_v0 }
  0x6e   :  { %499 = vmatpush1.bf16.msra.mxu0 %v1161_v15 }
  0x6f   :  { %500 = vmatprep.subr.bf16.mxu0 %v1164_v16 }
  0x70   :  { %1357 = vmatpush3.bf16.msra.mxu1 %v1190_v8  ;;  %v687_v8 = vld [vmem:[#allocation7 + $0x374] sm:$0xf] }
  0x71   :  { %1358 = vmatprep.subr.bf16.mxu1 %v1543_v0 }
  0x72   :  { %501 = vmatpush1.bf16.msra.mxu0 %v1163_v19 }
  0x73   :  { %502 = vmatprep.subr.bf16.mxu0 %v1166_v20 }
  0x76   :  { %503 = vmatpush1.bf16.msra.mxu0 %v1165_v23  ;;  %v548_v23 = vld [vmem:[#allocation7 + $0x190] sm:$0xf] }
  0x77   :  { %504 = vmatprep.subr.bf16.mxu0 %v1168_v24  ;;  %v549_v24 = vld [vmem:[#allocation7 + $0x1b0] sm:$0xf] }
  0x78   :  { %v1191_v25 = vcombine.low %v548_v23, %v549_v24 }
  0x7a   :  { %505 = vmatpush1.bf16.msra.mxu0 %v1167_v27  ;;  %1359 = vmatpush3.bf16.msra.mxu1 %v1191_v25  ;;  %v551_v27 = vld [vmem:[#allocation7 + $0x1f0] sm:$0xf]  ;;  %v674_v25 = vld [vmem:[#allocation7 + $0x1d4] sm:$0xf] }
  0x7b   :  { %506 = vmatprep.subr.bf16.mxu0 %v1170_v28  ;;  %1360 = vmatprep.subr.bf16.mxu1 %v1543_v0  ;;  %v1192_v28 = vcombine.low %v550_v26, %v551_v27  ;;  %v675_v26 = vld [vmem:[#allocation7 + $0x1f4] sm:$0xf] }
  0x7c   :  { %v1202_v27 = vcombine.low %v674_v25, %v675_v26  ;;  %v1007_v26 = vld [vmem:[#allocation7 + $0x7c] sm:$0xf] }
  0x7e   :  { %507 = vmatpush1.bf16.msra.mxu0 %v1169_v31  ;;  %1361 = vmatpush3.bf16.msra.mxu1 %v1192_v28  ;;  %v320_v31 = vsub.s32 0, %v1654_v30  ;;  %v837_v28 = vld [vmem:[#allocation7 + $0x18] sm:$0xf] }
  0x7f   :  { %508 = vmatprep.subr.bf16.mxu0 %v1172_v32  ;;  %v1660_v32 = vld [vmem:[%s1727_s3 + $0x2] sm:$0x3] }
  0x80   :  { %v321_v33 = vrot.slane %v1660_v32, %v320_v31  ;;  %v839_v31 = vld [vmem:[#allocation7 + $0x58] sm:$0xf] }
  0x82   :  { %509 = vmatpush1.bf16.msra.mxu0 %v1171_v35 }
  0x83   :  { %510 = vmatprep.subr.bf16.mxu0 %v1174_v36 }
  0x86   :  { %511 = vmatpush1.bf16.msra.mxu0 %v1173_v39 }
  0x87   :  { %512 = vmatprep.subr.bf16.mxu0 %v1176_v40 }
  0x8a   :  { %513 = vmatpush1.bf16.msra.mxu0 %v1175_v43  ;;  %v1203_v43 = vcombine.low %v676_v41, %v677_v42  ;;  %v844_v41 = vld [vmem:[#allocation7 + $0xf8] sm:$0xf] }
  0x8b   :  { %514 = vmatprep.subr.bf16.mxu0 %v1178_v44  ;;  %v660_v44 = vld [vmem:[#allocation7 + $0x14] sm:$0xf] }
  0x8c   :  { %v1195_v46 = vcombine.low %v660_v44, %v661_v45  ;;  %1257 = vmatprep.subr.bf16.mxu1 %v1203_v43  ;;  %v845_v43 = vld [vmem:[#allocation7 + $0x118] sm:$0xf] }
  0x8d   :  { %v846_v44 = vld [vmem:[#allocation7 + $0x138] sm:$0xf] }
  0x8e   :  { %515 = vmatpush1.bf16.msra.mxu0 %v1177_v47  ;;  %v678_v47 = vld [vmem:[#allocation7 + $0x254] sm:$0xf]  ;;  %v1215_v45 = vcombine.low %v845_v43, %v846_v44  ;;  %v1012_v44 = vld [vmem:[#allocation7 + $0x11c] sm:$0xf] }
  0x8f   :  { %516 = vmatprep.subr.bf16.mxu0 %v1180_v48  ;;  %v679_v48 = vld [vmem:[#allocation7 + $0x274] sm:$0xf] }
  0x92   :  { %517 = vmatpush1.bf16.msra.mxu0 %v1179_v49  ;;  %v1204_v49 = vcombine.low %v678_v47, %v679_v48  ;;  %v848_v47 = vld [vmem:[#allocation7 + $0x178] sm:$0xf] }
  0x93   :  { %518 = vmatprep.subr.bf16.mxu0 %v1182_v52  ;;  %v1196_v52 = vcombine.low %v662_v50, %v663_v51 }
  0x96   :  { %519 = vmatpush1.bf16.msra.mxu0 %v1181_v53  ;;  %v680_v53 = vld [vmem:[#allocation7 + $0x294] sm:$0xf] }
  0x97   :  { %1366 = vmatprep.subr.bf16.mxu0 %v1543_v0  ;;  %v1205_v55 = vcombine.low %v680_v53, %v681_v54  ;;  %v1184_v53 = vld [vmem:[%s1727_s3 + $0x4] ss:$0 sm:$0xff] }
 0x12c   :  { %v164_v11 = vpop.f32.mrb[0].mxu0 }
 0x12d   :  { %v1643_v12 = vadd.f32 %v1133_v9, %v164_v11  ;;  %v276_v13 = vpop.f32.mrb[0].mxu1  ;;  %v1324_v14 = vpop.f32.mrb[1].mxu0  ;;  %v1199_v9 = vcombine.low %v668_v4, %v669_v6  ;;  %v670_v11 = vld [vmem:[#allocation7 + $0x154] sm:$0xf] }
 0x12e   :  { %v1645_v15 = vadd.f32 %v1142_v10, %v276_v13  ;;  %v1344_v16 = vpop.f32.mrb[1].mxu1  ;;  %v167_v17 = vpop.f32.mrb[2].mxu0  ;;  %v1208_v10 = vcombine.low %v686_v7, %v687_v8  ;;  %v671_v13 = vld [vmem:[#allocation7 + $0x174] sm:$0xf] }
 0x12f   :  { %v314_v18 = vpack.c.bf16 %v1643_v12, %v1643_v12  ;;  %v279_v19 = vpop.f32.mrb[2].mxu1  ;;  %v1325_v20 = vpop.f32.mrb[3].mxu0  ;;  %v688_v14 = vld [vmem:[#allocation7 + $0x394] sm:$0xf]  ;;  %v1200_v17 = vcombine.low %v670_v11, %v671_v13 }
 0x130   :  { %v315_v21 = vpack.c.bf16 %v1645_v15, %v1645_v15  ;;  %v1345_v22 = vpop.f32.mrb[3].mxu1  ;;  %v689_v16 = vld [vmem:[#allocation7 + $0x3b4] sm:$0xf] }
 0x131   :  { %v672_v19 = vld [vmem:[#allocation7 + $0x194] sm:$0xf] }
 0x132   :  { %520 = vmatprep.mubr.bf16.mxu0 %v315_v21  ;;  %v673_v20 = vld [vmem:[#allocation7 + $0x1b4] sm:$0xf] }
 0x133   :  { %521 = vmatmul.mubr.bf16.vlgmr.msra.gmra.mrb[4].mxu0 %v314_v18  ;;  %v1209_v18 = vcombine.low %v688_v14, %v689_v16  ;;  %v690_v21 = vld [vmem:[#allocation7 + $0x3d4] sm:$0xf]  ;;  %v1201_v23 = vcombine.low %v672_v19, %v673_v20  ;;  %v1194_v14 = vld [vmem:[%s1727_s3 + $0x5] ss:$0 sm:$0xff] }
 0x134   :  { %1382 = vmatprep.mubr.msk.bf16.mxu0 %vm1544_vm0, %v1543_v0  ;;  %v691_v22 = vld [vmem:[#allocation7 + $0x3f4] sm:$0xf] }
 0x135   :  { %v1210_v24 = vcombine.low %v690_v21, %v691_v22  ;;  %v1004_v22 = vld [vmem:[#allocation7 + $0x1c] sm:$0xf] }
 0x206   :  { %v522_v34 = vpop.f32.mrb[4].mxu0 }
 0x207   :  { %v523_v35 = vadd.f32 %v522_v34, %v321_v33  ;;  %v1663_v36 = vpop.f32.mrb[5].mxu0  ;;  %v1211_v33 = vcombine.low %v837_v28, %v838_v29  ;;  %v840_v34 = vld [vmem:[#allocation7 + $0x78] sm:$0xf] }
 0x208   :  { %v526_v37 = vpop.f32.mrb[6].mxu0 }
 0x209   :  { %v529_v38 = vmax.f32 %v523_v35, 0.0  ;;  %v527_v39 = vpop.f32.mrb[7].mxu0  ;;  %1367 = vmatpush3.bf16.msra.mxu0 %v1211_v33  ;;  %v1212_v35 = vcombine.low %v839_v31, %v840_v34  ;;  %v841_v37 = vld [vmem:[#allocation7 + $0x98] sm:$0xf] }
 0x20a   :  { %1368 = vmatprep.subr.bf16.mxu0 %v1543_v0 }
 0x20b   :  { %v552_v40 = vpack.c.bf16 %v529_v38, %v529_v38  ;;  %v842_v38 = vld [vmem:[#allocation7 + $0xb8] sm:$0xf] }
 0x20c   :  { %v1213_v39 = vcombine.low %v841_v37, %v842_v38  ;;  %v1008_v38 = vld [vmem:[#allocation7 + $0x9c] sm:$0xf] }
 0x20d   :  { %1363 = vmatmul.mubr.bf16.vlgmr.msra.gmra.mrb[4].mxu1 %v552_v40  ;;  %1369 = vmatpush3.bf16.msra.mxu0 %v1212_v35  ;;  %v843_v40 = vld [vmem:[#allocation7 + $0xd8] sm:$0xf] }
 0x20e   :  { %1258 = vmatpush3.bf16.msra.mxu1 %v1195_v46  ;;  %1370 = vmatprep.subr.bf16.mxu0 %v1543_v0  ;;  %v1214_v42 = vcombine.low %v843_v40, %v844_v41  ;;  %v847_v46 = vld [vmem:[#allocation7 + $0x158] sm:$0xf]  ;;  %v1010_v41 = vld [vmem:[#allocation7 + $0xdc] sm:$0xf] }
 0x20f   :  { %1259 = vmatprep.subr.bf16.mxu1 %v1204_v49  ;;  %v1216_v48 = vcombine.low %v847_v46, %v848_v47  ;;  %v324_v49 = vsub.s32 1, %v1654_v30  ;;  %v1014_v47 = vld [vmem:[#allocation7 + $0x15c] sm:$0xf] }
 0x211   :  { %1371 = vmatpush3.bf16.msra.mxu0 %v1213_v39  ;;  %v325_v50 = vrot.slane %v1660_v32, %v324_v49 }
 0x212   :  { %1260 = vmatpush3.bf16.msra.mxu1 %v1196_v52  ;;  %1372 = vmatprep.subr.bf16.mxu0 %v1543_v0 }
 0x213   :  { %1261 = vmatprep.subr.bf16.mxu1 %v1205_v55  ;;  %v525_v51 = vadd.f32 %v1663_v36, %v325_v50  ;;  %v1016_v50 = vld [vmem:[#allocation7 + $0x19c] sm:$0xf] }
 0x215   :  { %1373 = vmatpush3.bf16.msra.mxu0 %v1214_v42  ;;  %v1183_v52 = vmul.f32 -1.442695, %v525_v51  ;;  %v1017_v51 = vld [vmem:[#allocation7 + $0x1bc] sm:$0xf] }
 0x216   :  { %1262 = vmatpush3.bf16.msra.mxu1 %v1197_v58  ;;  %1374 = vmatprep.subr.bf16.mxu0 %v1543_v0 }
 0x217   :  { %1263 = vmatprep.subr.bf16.mxu1 %v1206_v61  ;;  %1434 = vpow2.f32 %v1183_v52  ;;  %v1018_v52 = vld [vmem:[#allocation7 + $0x1dc] sm:$0xf] }
 0x219   :  { %1375 = vmatpush3.bf16.msra.mxu0 %v1215_v45 }
 0x21a   :  { %1264 = vmatpush3.bf16.msra.mxu1 %v1198_v1  ;;  %1376 = vmatprep.subr.bf16.mxu0 %v1543_v0 }
 0x21b   :  { %1265 = vmatprep.subr.bf16.mxu1 %v1207_v5 }
 0x21d   :  { %1377 = vmatpush3.bf16.msra.mxu0 %v1216_v48 }
 0x21e   :  { %1266 = vmatpush3.bf16.msra.mxu1 %v1199_v9  ;;  %1378 = vmatprep.subr.bf16.mxu0 %v1543_v0  ;;  %v851_v9 = vld [vmem:[#allocation7 + $0x1d8] sm:$0xf] }
 0x21f   :  { %1267 = vmatprep.subr.bf16.mxu1 %v1208_v10  ;;  %v852_v10 = vld [vmem:[#allocation7 + $0x1f8] sm:$0xf] }
 0x220   :  { %v1218_v11 = vcombine.low %v851_v9, %v852_v10 }
 0x221   :  { %v1435_v60 = vpop.eup %1434 }
 0x222   :  { %1268 = vmatpush3.bf16.msra.mxu1 %v1200_v17  ;;  %v533_v61 = vadd.f32 1.0, %v1435_v60 }
 0x223   :  { %1269 = vmatprep.subr.bf16.mxu1 %v1209_v18 }
 0x226   :  { %1270 = vmatpush3.bf16.msra.mxu1 %v1201_v23  ;;  %v1005_v23 = vld [vmem:[#allocation7 + $0x3c] sm:$0xf] }
 0x227   :  { %1271 = vmatprep.subr.bf16.mxu1 %v1210_v24  ;;  %v1006_v24 = vld [vmem:[#allocation7 + $0x5c] sm:$0xf]  ;;  %v1222_v25 = vcombine.low %v1004_v22, %v1005_v23 }
 0x22a   :  { %1272 = vmatpush3.bf16.msra.mxu1 %v1202_v27  ;;  %v1223_v27 = vcombine.low %v1006_v24, %v1007_v26 }
 0x22b   :  { %1386 = vmatprep.subr.bf16.mxu1 %v1543_v0 }
 0x2e0   :  { %v642_v54 = vpop.f32.mrb[4].mxu1 }
 0x2e1   :  { %v643_v55 = vadd.f32 %v1184_v53, %v642_v54  ;;  %v1364_v56 = vpop.f32.mrb[5].mxu1  ;;  %v1228_v53 = vcombine.low %v1016_v50, %v1017_v51  ;;  %v1019_v54 = vld [vmem:[#allocation7 + $0x1fc] sm:$0xf] }
 0x2e2   :  { %v645_v57 = vpop.f32.mrb[6].mxu1 }
 0x2e3   :  { %v1193_v58 = vmul.f32 -1.442695, %v643_v55  ;;  %v1365_v59 = vpop.f32.mrb[7].mxu1  ;;  %v1229_v55 = vcombine.low %v1018_v52, %v1019_v54 }
 0x2e5   :  { %1436 = vpow2.f32 %v1193_v58 }
 0x2e6   :  { %1438 = vrcp.f32 %v533_v61 }
 0x2ef   :  { %v1437_v30 = vpop.eup %1436 }
 0x2f0   :  { %v651_v32 = vadd.f32 1.0, %v1437_v30  ;;  %v1439_v36 = vpop.eup %1438  ;;  %v1219_v30 = vld [vmem:[%s1727_s3 + $0x6] ss:$0 sm:$0xff] }
 0x2f1   :  { %v655_v1 = vsub.f32 1.0, %v1439_v36 }
 0x2f2   :  { %1440 = vrcp.f32 %v651_v32 }
 0x2fc   :  { %v1441_v62 = vpop.eup %1440 }
 0x2fd   :  { %v654_v63 = vsub.f32 1.0, %v1441_v62  ;;  %v656_v2 = vmul.f32 %v1441_v62, %v1439_v36  ;;  %v1220_v36 = vld [vmem:[%s1727_s3 + $0x7] ss:$0 sm:$0xff] }
 0x2ff   :  { %v658_v3 = vmul.f32 %v655_v1, %v654_v63  ;;  %v657_v4 = vmul.f32 %v656_v2, %v1643_v12  ;;  %v849_v12 = vld [vmem:[#allocation7 + $0x198] sm:$0xf]  ;;  %v1221_v2 = vld [vmem:[%s1727_s3 + $0x8] ss:$0 sm:$0xff] }
 0x301   :  { %v659_v5 = vmul.f32 %v658_v3, %v1645_v15  ;;  %v692_v7 = vpack.c.bf16 %v657_v4, %v657_v4  ;;  %v850_v15 = vld [vmem:[#allocation7 + $0x1b8] sm:$0xf] }
 0x302   :  { %v1217_v8 = vcombine.low %v849_v12, %v850_v15 }
 0x303   :  { %v693_v6 = vpack.c.bf16 %v659_v5, %v659_v5 }
 0x304   :  { %1379 = vmatpush3.bf16.msra.mxu0 %v1217_v8 }
 0x305   :  { %829 = vmatprep.mubr.bf16.mxu1 %v693_v6  ;;  %1380 = vmatprep.subr.bf16.mxu0 %v1543_v0 }
 0x306   :  { %830 = vmatmul.mubr.bf16.vlgmr.msra.gmra.mrb[8].mxu1 %v692_v7 }
 0x307   :  { %1387 = vmatpush3.bf16.msra.mxu1 %v1211_v33  ;;  %1402 = vmatprep.mubr.msk.bf16.mxu1 %vm1544_vm0, %v1543_v0 }
 0x308   :  { %1388 = vmatprep.subr.bf16.mxu1 %v1543_v0  ;;  %1381 = vmatpush3.bf16.msra.mxu0 %v1218_v11 }
 0x309   :  { %1406 = vmatprep.subr.bf16.mxu0 %v1543_v0 }
 0x30b   :  { %1389 = vmatpush3.bf16.msra.mxu1 %v1212_v35 }
 0x30c   :  { %1390 = vmatprep.subr.bf16.mxu1 %v1543_v0 }
 0x30f   :  { %1391 = vmatpush3.bf16.msra.mxu1 %v1213_v39  ;;  %v1009_v39 = vld [vmem:[#allocation7 + $0xbc] sm:$0xf] }
 0x310   :  { %1392 = vmatprep.subr.bf16.mxu1 %v1543_v0  ;;  %v1224_v40 = vcombine.low %v1008_v38, %v1009_v39 }
 0x313   :  { %1393 = vmatpush3.bf16.msra.mxu1 %v1214_v42  ;;  %v1011_v42 = vld [vmem:[#allocation7 + $0xfc] sm:$0xf] }
 0x314   :  { %1394 = vmatprep.subr.bf16.mxu1 %v1543_v0  ;;  %v1225_v43 = vcombine.low %v1010_v41, %v1011_v42 }
 0x317   :  { %1395 = vmatpush3.bf16.msra.mxu1 %v1215_v45  ;;  %v1013_v45 = vld [vmem:[#allocation7 + $0x13c] sm:$0xf] }
 0x318   :  { %1396 = vmatprep.subr.bf16.mxu1 %v1543_v0  ;;  %v1226_v46 = vcombine.low %v1012_v44, %v1013_v45 }
 0x31b   :  { %1397 = vmatpush3.bf16.msra.mxu1 %v1216_v48  ;;  %v1015_v48 = vld [vmem:[#allocation7 + $0x17c] sm:$0xf] }
 0x31c   :  { %1398 = vmatprep.subr.bf16.mxu1 %v1543_v0  ;;  %v1227_v49 = vcombine.low %v1014_v47, %v1015_v48 }
 0x31f   :  { %1399 = vmatpush3.bf16.msra.mxu1 %v1217_v8 }
 0x320   :  { %1400 = vmatprep.subr.bf16.mxu1 %v1543_v0 }
 0x323   :  { %1401 = vmatpush3.bf16.msra.mxu1 %v1218_v11 }
 0x3d9   :  { %v1273_v13 = vpop.f32.mrb[8].mxu1 }
 0x3da   :  { %v1274_v16 = vpop.f32.mrb[9].mxu1 }
 0x3db   :  { %v1275_v17 = vadd.f32 %v1274_v16, %v1273_v13  ;;  %v1276_v18 = vpop.f32.mrb[10].mxu1 }
 0x3dc   :  { %v1277_v19 = vpop.f32.mrb[11].mxu1 }
 0x3dd   :  { %v832_v20 = vadd.f32 %v1275_v17, %v1194_v14 }
 0x3df   :  { %v853_v21 = vpack.c.bf16 %v832_v20, %v832_v20 }
 0x3e1   :  { %1383 = vmatmul.mubr.bf16.vlgmr.msra.gmra.mrb[8].mxu0 %v853_v21 }
 0x3e2   :  { %1422 = vmatprep.mubr.msk.bf16.mxu0 %vm1544_vm0, %v1543_v0  ;;  %1407 = vmatpush3.bf16.msra.mxu0 %v1222_v25 }
 0x3e3   :  { %1408 = vmatprep.subr.bf16.mxu0 %v1543_v0 }
 0x3e6   :  { %1409 = vmatpush3.bf16.msra.mxu0 %v1223_v27 }
 0x3e7   :  { %1410 = vmatprep.subr.bf16.mxu0 %v1543_v0 }
 0x3ea   :  { %1411 = vmatpush3.bf16.msra.mxu0 %v1224_v40 }
 0x3eb   :  { %1412 = vmatprep.subr.bf16.mxu0 %v1543_v0 }
 0x3ee   :  { %1413 = vmatpush3.bf16.msra.mxu0 %v1225_v43 }
 0x3ef   :  { %1414 = vmatprep.subr.bf16.mxu0 %v1543_v0 }
 0x3f2   :  { %1415 = vmatpush3.bf16.msra.mxu0 %v1226_v46 }
 0x3f3   :  { %1416 = vmatprep.subr.bf16.mxu0 %v1543_v0 }
 0x3f6   :  { %1417 = vmatpush3.bf16.msra.mxu0 %v1227_v49 }
 0x3f7   :  { %1418 = vmatprep.subr.bf16.mxu0 %v1543_v0 }
 0x3fa   :  { %1419 = vmatpush3.bf16.msra.mxu0 %v1228_v53 }
 0x3fb   :  { %1420 = vmatprep.subr.bf16.mxu0 %v1543_v0 }
 0x3fe   :  { %1421 = vmatpush3.bf16.msra.mxu0 %v1229_v55 }
 0x4b4   :  { %v936_v28 = vpop.f32.mrb[8].mxu0 }
 0x4b5   :  { %v942_v29 = vsub.f32 %v832_v20, %v936_v28  ;;  %v1384_v31 = vpop.f32.mrb[9].mxu0 }
 0x4b6   :  { %v939_v33 = vpop.f32.mrb[10].mxu0 }
 0x4b7   :  { %v943_v34 = vmul.f32 %v942_v29, %v942_v29  ;;  %v1385_v35 = vpop.f32.mrb[11].mxu0 }
 0x4b9   :  { %v944_v37 = vpack.c.bf16 %v943_v34, %v943_v34 }
 0x4bb   :  { %1403 = vmatmul.mubr.bf16.vlgmr.msra.gmra.mrb[12].mxu1 %v944_v37 }
 0x58e   :  { %v979_v56 = vpop.f32.mrb[12].mxu1 }
 0x58f   :  { %v980_v57 = vadd.f32 1e-05, %v979_v56  ;;  %v1404_v58 = vpop.f32.mrb[13].mxu1 }
 0x590   :  { %v982_v59 = vpop.f32.mrb[14].mxu1 }
 0x591   :  { %1442 = vrsqrt.f32 %v980_v57  ;;  %v1405_v60 = vpop.f32.mrb[15].mxu1 }
 0x59b   :  { %v1443_v61 = vpop.eup %1442 }
 0x59c   :  { %v986_v32 = vmul.f32 %v1443_v61, %v942_v29 }
 0x59e   :  { %v994_v62 = vmul.f32 %v1219_v30, %v986_v32 }
 0x5a0   :  { %v1002_v63 = vadd.f32 %v1220_v36, %v994_v62 }
 0x5a2   :  { %v1003_v0 = vmax.f32 %v1002_v63, 0.0 }
 0x5a4   :  { %v1020_v1 = vpack.c.bf16 %v1003_v0, %v1003_v0 }
 0x5a6   :  { %1423 = vmatmul.mubr.bf16.vlgmr.msra.gmra.mrb[12].mxu0 %v1020_v1 }
 0x679   :  { %v1110_v3 = vpop.f32.mrb[12].mxu0 }
 0x67a   :  { %v1111_v4 = vadd.f32 %v1221_v2, %v1110_v3  ;;  %v1424_v5 = vpop.f32.mrb[13].mxu0 }
 0x67b   :  { %v1113_v6 = vpop.f32.mrb[14].mxu0 }
 0x67c   :  { %1116 = vst [vmem:[#allocation8] sm:$0xff] %v1111_v4  ;;  %v1425_v7 = vpop.f32.mrb[15].mxu0 }
 0x67d   :  { %1521 = shalt.err (!%p1518_p0)
}
 0x67e   :  { %s1522_s3 = scalar_lea.hbm %s1728_s4, 128 }
 0x67f   :  { %p1523_p1 = scmp.ne.s32.totalorder %s1728_s4, %s1522_s3  ;;  %p1526_p2 = scmp.lt.u32.totalorder %s1522_s3, %s1728_s4 }
 0x681   :  { %p1528_p3 = pnand %p1526_p2, %p1523_p1 }
 0x683   :  { %1531 = shalt.err (!%p1528_p3)
}
 0x684   :  { %1126 = dma.vmem_to_hbm [thread:$0]  %s1124_s14, 128, %s1728_s4, [#allocation4]  }
 0x685   :  { %1536 = dma.done.wait [#allocation4], 128  }
 0x686   :  { %1537 = vsyncadd [#allocation4], 4294967168 }
 0x687   :  { %1130 = vsyncpa [#allocation3], 1 }
 0x688   :  { %1131 = vsyncpa [#allocation6], 1 }
 0x689   :  { %1132 = vsyncpa [#allocation4], 1 }

</bundles_post_ra>
